<compile_context>
chip_gen: v6e
topology: v6e:2x2x1
jax: 0.10.0
libtpu: 0.0.40
codegen_flags: <defaults>
</compile_context>

<pallas_src>
import jax
import jax.numpy as jnp
from jax.experimental import pallas as pl
from jax.experimental.pallas import tpu as pltpu


# ------------------------------ helpers ------------------------------------

def _round_up(x, m):
    return ((x + m - 1) // m) * m


def _choose_tm(M, cap=512):
    """Pick (tm, Mp): tm a multiple of 8 (or == Mp), Mp >= M with minimal padding.

    - Small M: one full-height block (or two, see below); padding is at most 7 rows.
    - Large M: the largest tm <= cap whose padding waste stays under ~3% (or 63 rows),
      so awkward M values don't burn 20-40% of the MXU on dead rows.
    - If everything fits a single block but M is reasonably big, split into two blocks
      so both of v7x's TensorCores get a 'parallel' block (one extra ~0.35us grid step
      on single-TC v5e/v6e -- negligible).
    """
    Mp = _round_up(M, 8)
    if Mp <= cap:
        if Mp >= 256 and (Mp // 2) % 8 == 0:
            return Mp // 2, Mp
        return Mp, Mp
    for tm in range(cap, 7, -8):
        mp = _round_up(M, tm)
        if mp - M <= max(63, M // 32):
            return tm, mp
    return 8, Mp


# --------------------------- Pallas kernels --------------------------------

def _normalize_cols_kernel(w_ref, wn_ref):
    """L2-normalize each column of the weight.

    Matches F.normalize(w, dim=0, eps=1e-12):  w / max(||w||_2, 1e-12)
    == w * rsqrt(max(sum(w*w), 1e-24)).  rsqrt lives on the EUP slot and the divide
    becomes a multiply.
    """
    w = w_ref[...].astype(jnp.float32)
    ss = jnp.sum(w * w, axis=0, keepdims=True)
    wn_ref[...] = (w * jax.lax.rsqrt(jnp.maximum(ss, 1e-24))).astype(wn_ref.dtype)


def _normlinear_matmul_kernel(x_ref, w_ref, o_ref):
    """One MXU dot per tile: (tm, K) @ (K, Nblk) -> (tm, Nblk).

    No K grid axis, no accumulator scratch: the full contraction is one dot with f32
    accumulation on the MXU.  x is cast to bf16 here (cheap VPU work hidden under the
    DMA/MXU) instead of in a separate wrapper-side XLA pad+cast pass.
    """
    x = x_ref[...].astype(w_ref.dtype)
    o_ref[...] = jnp.dot(x, w_ref[...],
                         preferred_element_type=jnp.float32).astype(o_ref.dtype)


# ------------------------------ wrappers ------------------------------------

def prepare_norm_linear_weight(w, *, compute_dtype=jnp.bfloat16,
                               resident_limit_bytes=8 * 1024 * 1024, tn=512):
    """Column-normalize the NormLinear weight ONCE (hoisted out of the matmul).

    Returns the normalized (bf16 by default) weight plus metadata.  Reuse the result
    for every forward call that shares this weight.
    """
    K, N = w.shape
    wf = w.astype(jnp.float32)
    itemsize = jnp.dtype(compute_dtype).itemsize
    resident = K * N * itemsize <= resident_limit_bytes

    if resident:
        # One shot, whole weight in VMEM; kept UNPADDED so the matmul output needs no
        # trailing [:, :N] slice copy.
        wn = pl.pallas_call(
            _normalize_cols_kernel,
            out_shape=jax.ShapeDtypeStruct((K, N), compute_dtype),
        )(wf)
    else:
        # Too big to keep resident: pad N to a lane-aligned tile so the matmul can
        # tile the weight over columns.  Zero-padded columns normalize to 0 and are
        # sliced away after the matmul.
        tn = min(tn, _round_up(N, 128))
        Np = _round_up(N, tn)
        wp = jnp.pad(wf, ((0, 0), (0, Np - N)))
        wn = pl.pallas_call(
            _normalize_cols_kernel,
            grid=(Np // tn,),
            in_specs=[pl.BlockSpec((K, tn), lambda j: (0, j))],
            out_specs=pl.BlockSpec((K, tn), lambda j: (0, j)),
            out_shape=jax.ShapeDtypeStruct((K, Np), compute_dtype),
            compiler_params=pltpu.CompilerParams(
                dimension_semantics=("parallel",)),
        )(wp)

    return {"wn": wn, "k_in": K, "n_out": N, "resident": resident, "tn": tn}


def apply_norm_linear(x, prepared, *, tm_cap=512, out_dtype=jnp.float32,
                      vmem_budget_bytes=24 * 1024 * 1024):
    """x: (..., in_dim) -> (..., out_dim) = x @ normalize(weight, dim=0)."""
    wn = prepared["wn"]
    K, N = prepared["k_in"], prepared["n_out"]
    Kw, Nw = wn.shape
    assert Kw == K

    lead = x.shape[:-1]
    assert x.shape[-1] == K, f"expected last dim {K}, got {x.shape[-1]}"
    x2 = x.reshape(-1, K)
    M = x2.shape[0]

    x_bytes = jnp.dtype(x2.dtype).itemsize
    w_bytes = jnp.dtype(wn.dtype).itemsize
    o_bytes = jnp.dtype(out_dtype).itemsize

    tm, Mp = _choose_tm(M, cap=tm_cap)

    if prepared["resident"]:
        # Whole normalized weight stays VMEM-resident across the grid; x and the
        # output are each touched exactly once.
        def vmem_need(t):
            return (2 * Kw * Nw * w_bytes        # weight (conservatively 2 buffers)
                    + 2 * t * K * x_bytes        # double-buffered f32 x tiles
                    + 2 * t * Nw * o_bytes)      # double-buffered output tiles

        while tm > 8 and vmem_need(tm) > vmem_budget_bytes:
            tm = max(8, (tm // 2) // 8 * 8)
            Mp = _round_up(M, tm)

        xp = x2 if Mp == M else jnp.pad(x2, ((0, Mp - M), (0, 0)))
        out = pl.pallas_call(
            _normlinear_matmul_kernel,
            grid=(Mp // tm,),
            in_specs=[
                pl.BlockSpec((tm, K), lambda i: (i, 0)),
                pl.BlockSpec((Kw, Nw), lambda i: (0, 0)),  # constant block -> resident
            ],
            out_specs=pl.BlockSpec((tm, Nw), lambda i: (i, 0)),
            out_shape=jax.ShapeDtypeStruct((Mp, Nw), out_dtype),
            compiler_params=pltpu.CompilerParams(
                dimension_semantics=("parallel",),
                vmem_limit_bytes=32 * 1024 * 1024),
        )(xp, wn)
    else:
        # Fallback for very large class counts: tile the weight over N as well.
        # TODO(synk): add a K-reduction grid axis if in_dim ever exceeds what a single
        #             (tm, K) x-tile can hold in VMEM.
        tn = prepared["tn"]
        Np = Nw

        def vmem_need(t):
            return (2 * t * K * x_bytes
                    + 2 * Kw * tn * w_bytes
                    + 2 * t * tn * o_bytes)

        while tm > 8 and vmem_need(tm) > vmem_budget_bytes:
            tm = max(8, (tm // 2) // 8 * 8)
            Mp = _round_up(M, tm)

        xp = x2 if Mp == M else jnp.pad(x2, ((0, Mp - M), (0, 0)))
        out = pl.pallas_call(
            _normlinear_matmul_kernel,
            grid=(Mp // tm, Np // tn),
            in_specs=[
                pl.BlockSpec((tm, K), lambda i, j: (i, 0)),
                pl.BlockSpec((Kw, tn), lambda i, j: (0, j)),
            ],
            out_specs=pl.BlockSpec((tm, tn), lambda i, j: (i, j)),
            out_shape=jax.ShapeDtypeStruct((Mp, Np), out_dtype),
            compiler_params=pltpu.CompilerParams(
                dimension_semantics=("parallel", "parallel"),
                vmem_limit_bytes=32 * 1024 * 1024),
        )(xp, wn)

    if Mp != M or Nw != N:
        out = out[:M, :N]
    return out.reshape(*lead, N)


def norm_linear(x, w, **kwargs):
    """Convenience one-shot NormLinear forward (prepare + apply)."""
    return apply_norm_linear(x, prepare_norm_linear_weight(w), **kwargs)


# --------------------------------- main --------------------------------------

if __name__ == "__main__":
    key = jax.random.PRNGKey(0)
    kx1, kx2, kw = jax.random.split(key, 3)

    # Small shapes consistent with how the SLR model uses NormLinear:
    # time-major sequence features (T, B, hidden) -> logits (T, B, num_classes).
    T, B, in_dim, out_dim = 8, 2, 64, 48
    x_seq = jax.random.normal(kx1, (T, B, in_dim), jnp.float32)
    x_conv = jax.random.normal(kx2, (T, B, in_dim), jnp.float32)

    # nn.init.xavier_uniform_(weight, gain=calculate_gain('relu'))
    bound = (2.0 ** 0.5) * (6.0 / (in_dim + out_dim)) ** 0.5
    w = jax.random.uniform(kw, (in_dim, out_dim), jnp.float32, -bound, bound)

    # Normalize the weight ONCE, reuse for both calls (conv_logits / sequence_logits style).
    prepared = prepare_norm_linear_weight(w)
    out_seq = apply_norm_linear(x_seq, prepared)
    out_conv = apply_norm_linear(x_conv, prepared)
    jax.block_until_ready(out_seq)
    jax.block_until_ready(out_conv)

    # Reference: torch.matmul(x, F.normalize(w, dim=0)) in pure JAX (f32).
    wn_ref = w / jnp.maximum(jnp.linalg.norm(w, axis=0, keepdims=True), 1e-12)
    ref_seq = x_seq @ wn_ref
    ref_conv = x_conv @ wn_ref

    assert out_seq.shape == (T, B, out_dim)
    assert out_conv.shape == (T, B, out_dim)
    max_err = max(float(jnp.max(jnp.abs(out_seq - ref_seq))),
                  float(jnp.max(jnp.abs(out_conv - ref_conv))))
    # bf16 MXU operands with f32 accumulation -> loose tolerance.
    assert max_err < 5e-2, f"max abs error too large: {max_err}"

    print("KERNEL_OK")
</pallas_src>

<mosaic_0001>
module attributes {stable_mosaic.version = 11 : i64} {
  func.func @_normalize_cols_kernel(%arg0: memref<64x48xf32, #tpu.memory_space<vmem>>, %arg1: memref<64x48xbf16, #tpu.memory_space<vmem>>) attributes {dimension_semantics = [], scalar_prefetch = 0 : i64, scratch_operands = 0 : i64, tpu.core_type = #tpu.core_type<tc>} {
    %c0 = arith.constant 0 : index
    %c0_0 = arith.constant 0 : index
    %0 = vector.load %arg0[%c0, %c0_0] : memref<64x48xf32, #tpu.memory_space<vmem>>, vector<64x48xf32>
    %1 = arith.mulf %0, %0 : vector<64x48xf32>
    %cst = arith.constant dense<0.000000e+00> : vector<48xf32>
    %2 = vector.multi_reduction <add>, %1, %cst [0] : vector<64x48xf32> to vector<48xf32>
    %3 = vector.shape_cast %2 : vector<48xf32> to vector<1x48xf32>
    %cst_1 = arith.constant 1.000000e-24 : f32
    %4 = vector.broadcast %cst_1 : f32 to vector<1x48xf32>
    %5 = arith.maximumf %3, %4 : vector<1x48xf32>
    %6 = math.rsqrt %5 : vector<1x48xf32>
    %7 = vector.broadcast %6 : vector<1x48xf32> to vector<64x48xf32>
    %8 = arith.mulf %0, %7 : vector<64x48xf32>
    %9 = arith.truncf %8 : vector<64x48xf32> to vector<64x48xbf16>
    %c0_2 = arith.constant 0 : index
    %c0_3 = arith.constant 0 : index
    %10 = vector.load %arg1[%c0_2, %c0_3] : memref<64x48xbf16, #tpu.memory_space<vmem>>, vector<64x48xbf16>
    tpu.vector_store %arg1[%c0_2, %c0_3], %9 {strides = array<i32>} : memref<64x48xbf16, #tpu.memory_space<vmem>>, vector<64x48xbf16>,
    return
  }
}

</mosaic_0001>

<bundles_post_ra>
// kernel: tpu_custom_call.1
= control target key start
LH: loop header
LB: loop body
LE: loop exit
PB: predicated region body
PF: predicated region fallthrough
CT: control target
= control target key end

     0   :  { %vm24_vm0 = vcmask 392192   ;;  %vm88_vm1 = vcmask 388096   ;;  %s193_s0 = inlined_call_operand.vmem [shape: f32[64,48], index: 0, kind: input, shape index: {}]   ;;  %s194_s1 = inlined_call_operand.vmem [shape: bf16[64,48], index: 1, kind: output, shape index: {}]  }
   0x1   :  { %v8_v0 = vld [vmem:[%s193_s0] sm:$0xff]  ;;  %v9_v1 = vld [vmem:[%s193_s0 + $0x8] sm:$0xff]  ;;  %v10_v2 = vld [vmem:[%s193_s0 + $0x10] sm:$0xff] }
   0x2   :  { %v11_v3 = vld [vmem:[%s193_s0 + $0x18] sm:$0xff]  ;;  %v12_v4 = vld [vmem:[%s193_s0 + $0x20] sm:$0xff]  ;;  %v16_v5 = vmul.f32 %v8_v0, %v8_v0  ;;  %v17_v6 = vmul.f32 %v9_v1, %v9_v1  ;;  %v18_v7 = vmul.f32 %v10_v2, %v10_v2  ;;  %v13_v8 = vld [vmem:[%s193_s0 + $0x28] sm:$0xff] }
   0x3   :  { %v19_v9 = vmul.f32 %v11_v3, %v11_v3  ;;  %v20_v10 = vmul.f32 %v12_v4, %v12_v4  ;;  %v14_v13 = vld [vmem:[%s193_s0 + $0x30] sm:$0xff]  ;;  %v21_v16 = vmul.f32 %v13_v8, %v13_v8  ;;  %v15_v18 = vld [vmem:[%s193_s0 + $0x38] sm:$0xff] }
   0x4   :  { %v25_v11 = vsel %vm24_vm0, %v16_v5, 0.0  ;;  %v26_v12 = vsel %vm24_vm0, %v17_v6, 0.0  ;;  %v28_v15 = vsel %vm24_vm0, %v18_v7, 0.0  ;;  %v22_v20 = vmul.f32 %v14_v13, %v14_v13 }
   0x5   :  { %v27_v14 = vadd.f32 %v26_v12, %v25_v11  ;;  %v30_v17 = vsel %vm24_vm0, %v19_v9, 0.0  ;;  %v32_v21 = vsel %vm24_vm0, %v20_v10, 0.0  ;;  %v23_v23 = vmul.f32 %v15_v18, %v15_v18 }
   0x6   :  { %v34_v24 = vsel %vm24_vm0, %v21_v16, 0.0  ;;  %v36_v26 = vsel %vm24_vm0, %v22_v20, 0.0 }
   0x7   :  { %v29_v19 = vadd.f32 %v28_v15, %v27_v14  ;;  %v38_v28 = vsel %vm24_vm0, %v23_v23, 0.0 }
   0x9   :  { %v31_v22 = vadd.f32 %v30_v17, %v29_v19 }
   0xb   :  { %v33_v25 = vadd.f32 %v32_v21, %v31_v22 }
   0xd   :  { %v35_v27 = vadd.f32 %v34_v24, %v33_v25 }
   0xf   :  { %v37_v29 = vadd.f32 %v36_v26, %v35_v27 }
  0x11   :  { %v39_v30 = vadd.f32 %v38_v28, %v37_v29 }
  0x13   :  { %v40_v31 = vrot.slane %v39_v30, 4 }
  0x15   :  { %v41_v32 = vadd.f32 %v40_v31, %v39_v30 }
  0x17   :  { %v42_v33 = vrot.slane %v41_v32, 2 }
  0x19   :  { %v43_v34 = vadd.f32 %v42_v33, %v41_v32 }
  0x1b   :  { %v44_v35 = vrot.slane %v43_v34, 1 }
  0x1d   :  { %v45_v36 = vadd.f32 %v44_v35, %v43_v34 }
  0x1f   :  { %v46_v37 = vmax.f32 %v45_v36, 1e-24 }
  0x21   :  { %117 = vrsqrt.f32 %v46_v37 }
  0x2e   :  { %v118_v38 = vpop.eup %117 }
  0x2f   :  { %v48_v39 = vmul.f32 %v118_v38, %v8_v0  ;;  %v49_v40 = vmul.f32 %v118_v38, %v9_v1  ;;  %v50_v41 = vmul.f32 %v118_v38, %v10_v2  ;;  %v51_v42 = vmul.f32 %v118_v38, %v11_v3 }
  0x30   :  { %v52_v43 = vmul.f32 %v118_v38, %v12_v4  ;;  %v53_v44 = vmul.f32 %v118_v38, %v13_v8  ;;  %v54_v45 = vmul.f32 %v118_v38, %v14_v13  ;;  %v55_v46 = vmul.f32 %v118_v38, %v15_v18 }
  0x31   :  { %v109_v47 = vpack.c.bf16 %v48_v39, %v48_v39  ;;  %v110_v48 = vpack.c.bf16 %v49_v40, %v49_v40  ;;  %v111_v49 = vpack.c.bf16 %v50_v41, %v50_v41  ;;  %v112_v50 = vpack.c.bf16 %v51_v42, %v51_v42 }
  0x32   :  { %v113_v51 = vpack.c.bf16 %v52_v43, %v52_v43  ;;  %v114_v52 = vpack.c.bf16 %v53_v44, %v53_v44  ;;  %v115_v53 = vpack.c.bf16 %v54_v45, %v54_v45  ;;  %v116_v54 = vpack.c.bf16 %v55_v46, %v55_v46 }
  0x33   :  { %89 = vst.msk [vmem:[%s194_s1] sm:$0xf] %vm88_vm1, %v109_v47  ;;  %90 = vst.msk [vmem:[%s194_s1 + $0x4] sm:$0xf] %vm88_vm1, %v110_v48 }
  0x34   :  { %91 = vst.msk [vmem:[%s194_s1 + $0x8] sm:$0xf] %vm88_vm1, %v111_v49  ;;  %92 = vst.msk [vmem:[%s194_s1 + $0xc] sm:$0xf] %vm88_vm1, %v112_v50 }
  0x35   :  { %93 = vst.msk [vmem:[%s194_s1 + $0x10] sm:$0xf] %vm88_vm1, %v113_v51  ;;  %94 = vst.msk [vmem:[%s194_s1 + $0x14] sm:$0xf] %vm88_vm1, %v114_v52 }
  0x36   :  { %95 = vst.msk [vmem:[%s194_s1 + $0x18] sm:$0xf] %vm88_vm1, %v115_v53  ;;  %96 = vst.msk [vmem:[%s194_s1 + $0x1c] sm:$0xf] %vm88_vm1, %v116_v54 }

</bundles_post_ra>
